<compile_context>
chip_gen: v5e
topology: v5e:2x2
jax: 0.10.0
libtpu: 0.0.40
codegen_flags: <defaults>
</compile_context>

<pallas_src>
import functools
import math

import jax
import jax.numpy as jnp
from jax.experimental import pallas as pl
from jax.experimental.pallas import tpu as pltpu


def _round_up(n, m):
    return ((n + m - 1) // m) * m


def pcnet_kernel(x_ref, w1_ref, b1_ref, w2_ref, b2_ref, o_ref):
    # fc1 + ReLU: cast x to bf16 in-kernel (MXU operand), accumulate f32, bias in f32.
    x = x_ref[...].astype(jnp.bfloat16)
    h = jnp.dot(x, w1_ref[...], preferred_element_type=jnp.float32)
    h = jnp.maximum(h + b1_ref[...], 0.0)
    # pc1: PCLayer forward is identity on the value path in eval mode.

    # fc2: bf16 into the MXU, f32 accumulation, f32 bias (padded lanes carry -1e30).
    logits = jnp.dot(h.astype(jnp.bfloat16), w2_ref[...],
                     preferred_element_type=jnp.float32) + b2_ref[...]

    # LogSoftmax over dim=1, numerically stable, all f32.  Padded lanes hold ~-1e30,
    # so exp underflows to 0 and they do not contribute to the log-sum-exp.
    m = jnp.max(logits, axis=1, keepdims=True)
    z = logits - m
    lse = jnp.log(jnp.sum(jnp.exp(z), axis=1, keepdims=True))
    # pc2: identity on the value path.
    o_ref[...] = (z - lse).astype(o_ref.dtype)


def prepare_params(w1, b1, w2, b2):
    """One-time weight preprocessing (pad + cast); keep out of the per-batch hot path.

    w1: (In, Hd); b1: (Hd,); w2: (Hd, O); b2: (O,)  [= PyTorch weights transposed]
    """
    In, Hd = w1.shape
    O = w2.shape[1]
    Hd_p = _round_up(Hd, 128)
    O_p = _round_up(O, 128)

    w1 = jnp.asarray(w1, jnp.float32)
    b1 = jnp.asarray(b1, jnp.float32)
    w2 = jnp.asarray(w2, jnp.float32)
    b2 = jnp.asarray(b2, jnp.float32)

    # Hidden padding is exact: ReLU(0 + 0) = 0 and zero W2 rows contribute nothing.
    if Hd_p != Hd:
        w1 = jnp.pad(w1, ((0, 0), (0, Hd_p - Hd)))
        b1 = jnp.pad(b1, (0, Hd_p - Hd))
        w2 = jnp.pad(w2, ((0, Hd_p - Hd), (0, 0)))
    # Output padding: zero weight columns + large-finite-negative bias lanes so the
    # padded logits vanish in the softmax without risking inf-inf NaNs.
    if O_p != O:
        w2 = jnp.pad(w2, ((0, 0), (0, O_p - O)))
        b2 = jnp.pad(b2.reshape(1, O), ((0, 0), (0, O_p - O)), constant_values=-1e30)
    else:
        b2 = b2.reshape(1, O_p)

    return {
        "w1": w1.astype(jnp.bfloat16),              # (In, Hd_p) bf16, VMEM-resident
        "b1": b1.reshape(1, Hd_p).astype(jnp.float32),
        "w2": w2.astype(jnp.bfloat16),              # (Hd_p, O_p) bf16, VMEM-resident
        "b2": b2.astype(jnp.float32),
        "out_features": O,
    }


def _pick_batch_tile(B, max_batch_tile):
    """Batch tile: multiple of 16 (bf16 sublane packing), >=2 tiles once B >= 32 so
    the parallel grid axis can shard across v7x's 2 TensorCores, capped for VMEM."""
    min_tiles = 2 if B >= 32 else 1
    n_target = max(min_tiles, pl.cdiv(B, max_batch_tile))
    TB = _round_up(pl.cdiv(B, n_target), 16)
    if TB > B:
        TB = B  # block == full dim is always a legal block shape
    return TB


def pcnet_apply(x, params, *, max_batch_tile=2048):
    """x: (B, ...) -> log-probs (B, out_features)."""
    B = x.shape[0]
    x2 = x.reshape(B, -1)
    if not jnp.issubdtype(x2.dtype, jnp.floating):
        x2 = x2.astype(jnp.float32)
    In = x2.shape[1]

    w1, b1, w2, b2 = params["w1"], params["b1"], params["w2"], params["b2"]
    O = params["out_features"]
    Hd_p = w1.shape[1]
    O_p = w2.shape[1]
    assert w1.shape[0] == In, (w1.shape, In)

    TB = _pick_batch_tile(B, max_batch_tile)
    n_tiles = pl.cdiv(B, TB)

    x_bytes = jnp.dtype(x2.dtype).itemsize
    # VMEM budget: double-buffered x tile + resident weights/biases + double-buffered
    # output tile + f32 intermediates (h, logits/exp), with ~1.5x + 4 MiB headroom.
    vmem_need = (2 * TB * In * x_bytes
                 + In * Hd_p * 2 + Hd_p * O_p * 2
                 + (Hd_p + O_p) * 4
                 + 2 * TB * O_p * 4
                 + TB * (Hd_p + 2 * O_p) * 4)
    vmem_limit = min(64 << 20, max(24 << 20, (vmem_need * 3) // 2 + (4 << 20)))

    cost = pl.CostEstimate(
        flops=2 * B * (In * Hd_p + Hd_p * O_p),
        transcendentals=B * O_p,
        bytes_accessed=(B * In * x_bytes + w1.size * 2 + w2.size * 2
                        + (Hd_p + O_p) * 4 + B * O_p * 4),
    )

    out = pl.pallas_call(
        pcnet_kernel,
        out_shape=jax.ShapeDtypeStruct((B, O_p), jnp.float32),
        grid=(n_tiles,),
        in_specs=[
            pl.BlockSpec((TB, In), lambda i: (i, 0)),     # x tile, pipelined over batch
            pl.BlockSpec((In, Hd_p), lambda i: (0, 0)),   # W1 resident across the grid
            pl.BlockSpec((1, Hd_p), lambda i: (0, 0)),    # b1 resident
            pl.BlockSpec((Hd_p, O_p), lambda i: (0, 0)),  # W2 resident
            pl.BlockSpec((1, O_p), lambda i: (0, 0)),     # b2 resident
        ],
        out_specs=pl.BlockSpec((TB, O_p), lambda i: (i, 0)),  # lane-dense (128) output
        compiler_params=pltpu.CompilerParams(
            dimension_semantics=("parallel",),
            vmem_limit_bytes=int(vmem_limit),
        ),
        cost_estimate=cost,
    )(x2, w1, b1, w2, b2)

    return out[:, :O]


def predictive_coding_net(x, w1, b1, w2, b2, *, max_batch_tile=2048):
    """Convenience wrapper: prepares (pads/casts) the weights and runs the kernel."""
    return pcnet_apply(x, prepare_params(w1, b1, w2, b2), max_batch_tile=max_batch_tile)


def init_params(key, input_size, hidden_size, output_size):
    """Deterministic init mimicking PyTorch nn.Linear defaults (uniform +/- 1/sqrt(fan_in))."""
    k1, k2, k3, k4 = jax.random.split(key, 4)
    bound1 = 1.0 / math.sqrt(input_size)
    bound2 = 1.0 / math.sqrt(hidden_size)
    # Stored as (in, out) == PyTorch weight.T
    w1 = jax.random.uniform(k1, (input_size, hidden_size), jnp.float32, -bound1, bound1)
    b1 = jax.random.uniform(k2, (hidden_size,), jnp.float32, -bound1, bound1)
    w2 = jax.random.uniform(k3, (hidden_size, output_size), jnp.float32, -bound2, bound2)
    b2 = jax.random.uniform(k4, (output_size,), jnp.float32, -bound2, bound2)
    return w1, b1, w2, b2


def _reference(x, w1, b1, w2, b2):
    """Pure-JAX f32 reference of the same forward pass."""
    B = x.shape[0]
    x2 = x.reshape(B, -1).astype(jnp.float32)
    h = jnp.maximum(x2 @ w1 + b1, 0.0)
    logits = h @ w2 + b2
    return jax.nn.log_softmax(logits, axis=1)


if __name__ == "__main__":
    # Module defaults: input_size = 28*28, hidden_size = 64, output_size = 10.
    B, C, H, W = 2, 1, 28, 28
    input_size, hidden_size, output_size = C * H * W, 64, 10

    key = jax.random.PRNGKey(0)
    kx, kp = jax.random.split(key)
    x = jax.random.normal(kx, (B, C, H, W), dtype=jnp.float32)
    w1, b1, w2, b2 = init_params(kp, input_size, hidden_size, output_size)

    # Hoist the one-time weight prep out of the hot path; jit the per-batch apply.
    params = prepare_params(w1, b1, w2, b2)
    forward = jax.jit(functools.partial(pcnet_apply, params=params))

    out = forward(x)
    out = jax.block_until_ready(out)

    # Sanity: log-softmax rows should (log-)sum to ~0, and match the f32 reference
    # within bf16-matmul tolerance.
    assert out.shape == (B, output_size)
    row_logsumexp = jax.scipy.special.logsumexp(out, axis=1)
    assert jnp.allclose(row_logsumexp, 0.0, atol=1e-4)
    ref = _reference(x, w1, b1, w2, b2)
    assert jnp.allclose(out, ref, atol=5e-2), float(jnp.max(jnp.abs(out - ref)))

    # TODO(synk): PCLayer energy bookkeeping (sum 0.5*(mu - x)^2 held during training)
    # is training-time state, not part of the eval forward output; only the identity
    # value path is implemented here.
    print("KERNEL_OK")
</pallas_src>

<mosaic_0001>
module attributes {stable_mosaic.version = 11 : i64} {
  func.func @pcnet_kernel(%arg0: i32, %arg1: memref<2x784xf32, #tpu.memory_space<vmem>>, %arg2: memref<784x128xbf16, #tpu.memory_space<vmem>>, %arg3: memref<1x128xf32, #tpu.memory_space<vmem>>, %arg4: memref<128x128xbf16, #tpu.memory_space<vmem>>, %arg5: memref<1x128xf32, #tpu.memory_space<vmem>>, %arg6: memref<2x128xf32, #tpu.memory_space<vmem>>) attributes {dimension_semantics = [#tpu.dimension_semantics<parallel>], iteration_bounds = array<i64: 1>, scalar_prefetch = 0 : i64, scratch_operands = 0 : i64, tpu.core_type = #tpu.core_type<tc>, window_params = [{transform_indices = @transform_0, window_bounds = array<i64: 2, 784>}, {pipeline_mode = #tpu.pipeline_mode<synchronous>, transform_indices = @transform_1, window_bounds = array<i64: 784, 128>}, {pipeline_mode = #tpu.pipeline_mode<synchronous>, transform_indices = @transform_2, window_bounds = array<i64: 1, 128>}, {pipeline_mode = #tpu.pipeline_mode<synchronous>, transform_indices = @transform_3, window_bounds = array<i64: 128, 128>}, {pipeline_mode = #tpu.pipeline_mode<synchronous>, transform_indices = @transform_4, window_bounds = array<i64: 1, 128>}, {transform_indices = @transform_5, window_bounds = array<i64: 2, 128>}]} {
    %c0 = arith.constant 0 : index
    %c0_0 = arith.constant 0 : index
    %0 = vector.load %arg1[%c0, %c0_0] : memref<2x784xf32, #tpu.memory_space<vmem>>, vector<2x784xf32>
    %1 = arith.truncf %0 : vector<2x784xf32> to vector<2x784xbf16>
    %c0_1 = arith.constant 0 : index
    %c0_2 = arith.constant 0 : index
    %2 = vector.load %arg2[%c0_1, %c0_2] : memref<784x128xbf16, #tpu.memory_space<vmem>>, vector<784x128xbf16>
    %cst = arith.constant dense<0.000000e+00> : vector<2x128xf32>
    %3 = tpu.matmul %1, %2, %cst {dimension_numbers = #tpu.dot_dimension_numbers<[1], [0], [0], [1], [0, 0, 1, 1], [], []>} : vector<2x784xbf16>, vector<784x128xbf16>, vector<2x128xf32> -> vector<2x128xf32>
    %c0_3 = arith.constant 0 : index
    %c0_4 = arith.constant 0 : index
    %4 = vector.load %arg3[%c0_3, %c0_4] : memref<1x128xf32, #tpu.memory_space<vmem>>, vector<1x128xf32>
    %5 = vector.broadcast %4 : vector<1x128xf32> to vector<2x128xf32>
    %6 = arith.addf %3, %5 : vector<2x128xf32>
    %cst_5 = arith.constant 0.000000e+00 : f32
    %7 = vector.broadcast %cst_5 : f32 to vector<2x128xf32>
    %8 = arith.maximumf %6, %7 : vector<2x128xf32>
    %9 = arith.truncf %8 : vector<2x128xf32> to vector<2x128xbf16>
    %c0_6 = arith.constant 0 : index
    %c0_7 = arith.constant 0 : index
    %10 = vector.load %arg4[%c0_6, %c0_7] : memref<128x128xbf16, #tpu.memory_space<vmem>>, vector<128x128xbf16>
    %cst_8 = arith.constant dense<0.000000e+00> : vector<2x128xf32>
    %11 = tpu.matmul %9, %10, %cst_8 {dimension_numbers = #tpu.dot_dimension_numbers<[1], [0], [0], [1], [0, 0, 1, 1], [], []>} : vector<2x128xbf16>, vector<128x128xbf16>, vector<2x128xf32> -> vector<2x128xf32>
    %c0_9 = arith.constant 0 : index
    %c0_10 = arith.constant 0 : index
    %12 = vector.load %arg5[%c0_9, %c0_10] : memref<1x128xf32, #tpu.memory_space<vmem>>, vector<1x128xf32>
    %13 = vector.broadcast %12 : vector<1x128xf32> to vector<2x128xf32>
    %14 = arith.addf %11, %13 : vector<2x128xf32>
    %cst_11 = arith.constant dense<0xFF800000> : vector<2xf32>
    %15 = vector.multi_reduction <maximumf>, %14, %cst_11 [1] : vector<2x128xf32> to vector<2xf32>
    %16 = vector.shape_cast %15 : vector<2xf32> to vector<2x1xf32>
    %17 = vector.broadcast %16 : vector<2x1xf32> to vector<2x128xf32>
    %18 = arith.subf %14, %17 : vector<2x128xf32>
    %19 = math.exp %18 : vector<2x128xf32>
    %cst_12 = arith.constant dense<0.000000e+00> : vector<2xf32>
    %20 = vector.multi_reduction <add>, %19, %cst_12 [1] : vector<2x128xf32> to vector<2xf32>
    %21 = vector.shape_cast %20 : vector<2xf32> to vector<2x1xf32>
    %22 = math.log %21 : vector<2x1xf32>
    %23 = vector.broadcast %22 : vector<2x1xf32> to vector<2x128xf32>
    %24 = arith.subf %18, %23 : vector<2x128xf32>
    %c0_13 = arith.constant 0 : index
    %c0_14 = arith.constant 0 : index
    %25 = vector.load %arg6[%c0_13, %c0_14] : memref<2x128xf32, #tpu.memory_space<vmem>>, vector<2x128xf32>
    tpu.vector_store %arg6[%c0_13, %c0_14], %24 {strides = array<i32>} : memref<2x128xf32, #tpu.memory_space<vmem>>, vector<2x128xf32>,
    return
  }
  func.func @transform_0(%arg0: i32) -> (i32, i32) {
    %c0_i32 = arith.constant 0 : i32
    %c0_i32_0 = arith.constant 0 : i32
    return %arg0, %c0_i32 : i32, i32
  }
  func.func @transform_1(%arg0: i32) -> (i32, i32) {
    %c0_i32 = arith.constant 0 : i32
    %c0_i32_0 = arith.constant 0 : i32
    %c0_i32_1 = arith.constant 0 : i32
    return %c0_i32, %c0_i32_0 : i32, i32
  }
  func.func @transform_2(%arg0: i32) -> (i32, i32) {
    %c0_i32 = arith.constant 0 : i32
    %c0_i32_0 = arith.constant 0 : i32
    %c0_i32_1 = arith.constant 0 : i32
    return %c0_i32, %c0_i32_0 : i32, i32
  }
  func.func @transform_3(%arg0: i32) -> (i32, i32) {
    %c0_i32 = arith.constant 0 : i32
    %c0_i32_0 = arith.constant 0 : i32
    %c0_i32_1 = arith.constant 0 : i32
    return %c0_i32, %c0_i32_0 : i32, i32
  }
  func.func @transform_4(%arg0: i32) -> (i32, i32) {
    %c0_i32 = arith.constant 0 : i32
    %c0_i32_0 = arith.constant 0 : i32
    %c0_i32_1 = arith.constant 0 : i32
    return %c0_i32, %c0_i32_0 : i32, i32
  }
  func.func @transform_5(%arg0: i32) -> (i32, i32) {
    %c0_i32 = arith.constant 0 : i32
    %c0_i32_0 = arith.constant 0 : i32
    return %arg0, %c0_i32 : i32, i32
  }
}

</mosaic_0001>

<bundles_post_ra>
// kernel: pcnet_apply.1
= control target key start
LH: loop header
LB: loop body
LE: loop exit
PB: predicated region body
PF: predicated region fallthrough
CT: control target
= control target key end

     0   :  { %10 = vsyncpa [#allocation3], 0  ;;  %s1095_s0 = inlined_call_operand.vmem [shape: f32[2,784], index: 0, kind: input, shape index: {}]   ;;  %s1096_s1 = inlined_call_operand.hbm [shape: bf16[784,128], index: 1, kind: input, shape index: {}]   ;;  %s1097_s2 = inlined_call_operand.vmem [shape: f32[1,128], index: 2, kind: input, shape index: {}]   ;;  %s1098_s3 = inlined_call_operand.vmem [shape: bf16[128,128], index: 3, kind: input, shape index: {}]   ;;  %s1099_s4 = inlined_call_operand.vmem [shape: f32[1,128], index: 4, kind: input, shape index: {}]   ;;  %s1100_s5 = inlined_call_operand.hbm [shape: f32[2,128], index: 5, kind: output, shape index: {}]  }
   0x1   :  { %11 = vsyncpa [#allocation4], 0  ;;  %s18_s20 = sshll.u32 %s1096_s1, 4  ;;  %s1019_s21 = smov [#allocation2]   ;;  %s19_s20 = int_to_ptr.hbm [resolvable:$true] %s18_s20 }
   0x2   :  { %s20_s22 = sshll.u32 %s1019_s21, 4  ;;  %s1020_s23 = smov 64   ;;  %s21_s22 = int_to_ptr.vmem [resolvable:$true] %s20_s22 }
   0x3   :  { %s1021_s24 = smov 4  }
   0x4   :  { %26 = dma.hbm_to_vmem [thread:$0]  %s19_s20, 6272, %s21_s22, [#allocation3], %s1020_s23, %s1020_s23, %s1021_s24  }
   0x5   :  { %1015 = dma.done.wait [#allocation3], 6272  }
   0x6   :  { %1016 = vsyncadd [#allocation3], 4294961024  ;;  %v907_v0 = vld [vmem:[#allocation2 + $0x38] sm:$0xff]  ;;  %v906_v3 = vld [vmem:[#allocation2 + $0x30] sm:$0xff]  ;;  %vm462_vm0 = vcmask 130048   ;;  %vm640_vm1 = vcmask 1041408  }
   0x7   :  { %v915_v1 = vld [vmem:[#allocation2 + $0x78] sm:$0xff]  ;;  %466 = vmatpush.bf16.msra.mxu0 %v907_v0  ;;  %v914_v4 = vld [vmem:[#allocation2 + $0x70] sm:$0xff]  ;;  %v905_v8 = vld [vmem:[#allocation2 + $0x28] sm:$0xff]  ;;  %s1022_s20 = smov [#allocation5]   ;;  %s661_s23 = sshll.u32 %s1100_s5, 4  ;;  %s662_s23 = int_to_ptr.hbm [resolvable:$true] %s661_s23 }
   0x8   :  { %v923_v2 = vld [vmem:[#allocation2 + $0xb8] sm:$0xff]  ;;  %479 = vmatpush.bf16.msra.mxu1 %v915_v1  ;;  %v922_v5 = vld [vmem:[#allocation2 + $0xb0] sm:$0xff]  ;;  %v913_v9 = vld [vmem:[#allocation2 + $0x68] sm:$0xff]  ;;  %s659_s21 = sshll.u32 %s1022_s20, 4  ;;  %s660_s21 = int_to_ptr.vmem [resolvable:$true] %s659_s21 }
   0x9   :  { %492 = vmatpush.bf16.msra.mxu2 %v923_v2  ;;  %v931_v6 = vld [vmem:[#allocation2 + $0xf8] sm:$0xff]  ;;  %v930_v7 = vld [vmem:[#allocation2 + $0xf0] sm:$0xff]  ;;  %v921_v10 = vld [vmem:[#allocation2 + $0xa8] sm:$0xff] }
   0xa   :  { %505 = vmatpush.bf16.msra.mxu3 %v931_v6  ;;  %v929_v11 = vld [vmem:[#allocation2 + $0xe8] sm:$0xff]  ;;  %v904_v12 = vld [vmem:[#allocation2 + $0x20] sm:$0xff]  ;;  %v38_v15 = vld [vmem:[%s1095_s0] sm:$0xff] }
   0xb   :  { %467 = vmatpush.bf16.msra.mxu0 %v906_v3  ;;  %v912_v13 = vld [vmem:[#allocation2 + $0x60] sm:$0xff]  ;;  %42 = vst [vmem:[#allocation1] ss:$4 sm:$0xff] %v38_v15  ;;  %v903_v17 = vld [vmem:[#allocation2 + $0x18] sm:$0xff]  ;;  %v902_v22 = vld [vmem:[#allocation2 + $0x10] sm:$0xff] }
   0xc   :  { %480 = vmatpush.bf16.msra.mxu1 %v914_v4  ;;  %v920_v14 = vld [vmem:[#allocation2 + $0xa0] sm:$0xff]  ;;  %v911_v18 = vld [vmem:[#allocation2 + $0x58] sm:$0xff]  ;;  %v910_v23 = vld [vmem:[#allocation2 + $0x50] sm:$0xff] }
   0xd   :  { %493 = vmatpush.bf16.msra.mxu2 %v922_v5  ;;  %v928_v16 = vld [vmem:[#allocation2 + $0xe0] sm:$0xff]  ;;  %v919_v20 = vld [vmem:[#allocation2 + $0x98] sm:$0xff]  ;;  %v918_v24 = vld [vmem:[#allocation2 + $0x90] sm:$0xff] }
   0xe   :  { %506 = vmatpush.bf16.msra.mxu3 %v930_v7  ;;  %v39_v19 = vld [vmem:[%s1095_s0 + $0x8] sm:$0x3f]  ;;  %v927_v21 = vld [vmem:[#allocation2 + $0xd8] sm:$0xff]  ;;  %v926_v25 = vld [vmem:[#allocation2 + $0xd0] sm:$0xff] }
   0xf   :  { %468 = vmatpush.bf16.msra.mxu0 %v905_v8  ;;  %44 = vst [vmem:[#allocation1 + $0x20] ss:$4 sm:$0xff] %v39_v19  ;;  %v901_v26 = vld [vmem:[#allocation2 + $0x8] sm:$0xff]  ;;  %v900_v29 = vld [vmem:[#allocation2] sm:$0xff]  ;;  %v939_v34 = vld [vmem:[#allocation2 + $0x138] sm:$0xff] }
  0x10   :  { %481 = vmatpush.bf16.msra.mxu1 %v913_v9  ;;  %v909_v27 = vld [vmem:[#allocation2 + $0x48] sm:$0xff]  ;;  %v908_v30 = vld [vmem:[#allocation2 + $0x40] sm:$0xff]  ;;  %v947_v35 = vld [vmem:[#allocation2 + $0x178] sm:$0xff] }
  0x11   :  { %494 = vmatpush.bf16.msra.mxu2 %v921_v10  ;;  %v917_v28 = vld [vmem:[#allocation2 + $0x88] sm:$0xff]  ;;  %v916_v36 = vld [vmem:[#allocation2 + $0x80] sm:$0xff]  ;;  %v938_v43 = vld [vmem:[#allocation2 + $0x130] sm:$0xff] }
  0x12   :  { %507 = vmatpush.bf16.msra.mxu3 %v929_v11  ;;  %v925_v31 = vld [vmem:[#allocation2 + $0xc8] sm:$0xff]  ;;  %v45_v32 = vld.sshfl [vmem:[#allocation1] sm:$0xff pattern:$0x73625140]  ;;  %v924_v40 = vld [vmem:[#allocation2 + $0xc0] sm:$0xff] }
  0x13   :  { %469 = vmatpush.bf16.msra.mxu0 %v904_v12  ;;  %v46_v33 = vld.sshfl [vmem:[#allocation1 + $0x8] sm:$0xff pattern:$0x73625140]  ;;  %v47_v37 = vld.sshfl [vmem:[#allocation1 + $0x10] sm:$0xff pattern:$0x73625140]  ;;  %v59_v38 = vpack.c.bf16 %v45_v32, %v45_v32 }
  0x14   :  { %482 = vmatpush.bf16.msra.mxu1 %v912_v13  ;;  %v60_v39 = vpack.c.bf16 %v46_v33, %v46_v33  ;;  %v948_v41 = vld [vmem:[#allocation2 + $0x180] sm:$0xff]  ;;  %v48_v42 = vld.sshfl [vmem:[#allocation1 + $0x18] sm:$0xff pattern:$0x73625140]  ;;  %v61_v45 = vpack.c.bf16 %v47_v37, %v47_v37  ;;  %v937_v47 = vld [vmem:[#allocation2 + $0x128] sm:$0xff] }
  0x15   :  { %495 = vmatpush.bf16.msra.mxu2 %v920_v14  ;;  %v946_v44 = vld [vmem:[#allocation2 + $0x170] sm:$0xff]  ;;  %v62_v46 = vpack.c.bf16 %v48_v42, %v48_v42  ;;  %v945_v48 = vld [vmem:[#allocation2 + $0x168] sm:$0xff]  ;;  %v936_v49 = vld [vmem:[#allocation2 + $0x120] sm:$0xff] }
  0x16   :  { %508 = vmatpush.bf16.msra.mxu3 %v928_v16  ;;  %v944_v50 = vld [vmem:[#allocation2 + $0x160] sm:$0xff]  ;;  %v935_v51 = vld [vmem:[#allocation2 + $0x118] sm:$0xff]  ;;  %v51_v53 = vld.sshfl [vmem:[#allocation1 + $0x30] sm:$0xff pattern:$0x73625140] }
  0x17   :  { %470 = vmatpush.bf16.msra.mxu0 %v903_v17  ;;  %v943_v52 = vld [vmem:[#allocation2 + $0x158] sm:$0xff]  ;;  %v934_v54 = vld [vmem:[#allocation2 + $0x110] sm:$0xff]  ;;  %v65_v56 = vpack.c.bf16 %v51_v53, %v51_v53  ;;  %v933_v57 = vld [vmem:[#allocation2 + $0x108] sm:$0xff] }
  0x18   :  { %483 = vmatpush.bf16.msra.mxu1 %v911_v18  ;;  %v942_v55 = vld [vmem:[#allocation2 + $0x150] sm:$0xff]  ;;  %v941_v58 = vld [vmem:[#allocation2 + $0x148] sm:$0xff]  ;;  %v932_v59 = vld [vmem:[#allocation2 + $0x100] sm:$0xff] }
  0x19   :  { %496 = vmatpush.bf16.msra.mxu2 %v919_v20  ;;  %v940_v60 = vld [vmem:[#allocation2 + $0x140] sm:$0xff]  ;;  %v49_v61 = vld.sshfl [vmem:[#allocation1 + $0x20] sm:$0xff pattern:$0x73625140]  ;;  %v956_v1 = vld [vmem:[%s1098_s3 + $0x38] sm:$0xff] }
  0x1a   :  { %509 = vmatpush.bf16.msra.mxu3 %v927_v21  ;;  %v50_v62 = vld.sshfl [vmem:[#allocation1 + $0x28] sm:$0xff pattern:$0x73625140]  ;;  %v63_v63 = vpack.c.bf16 %v49_v61, %v49_v61  ;;  %v955_v2 = vld [vmem:[%s1098_s3 + $0x30] sm:$0xff]  ;;  %v953_v4 = vld [vmem:[%s1098_s3 + $0x20] sm:$0xff] }
  0x1b   :  { %471 = vmatpush.bf16.msra.mxu0 %v902_v22  ;;  %v64_v0 = vpack.c.bf16 %v50_v62, %v50_v62  ;;  %v954_v3 = vld [vmem:[%s1098_s3 + $0x28] sm:$0xff]  ;;  %v952_v5 = vld [vmem:[%s1098_s3 + $0x18] sm:$0xff]  ;;  %v951_v6 = vld [vmem:[%s1098_s3 + $0x10] sm:$0xff] }
  0x1c   :  { %484 = vmatpush.bf16.msra.mxu1 %v910_v23  ;;  %v950_v7 = vld [vmem:[%s1098_s3 + $0x8] sm:$0xff]  ;;  %v949_v10 = vld [vmem:[%s1098_s3] sm:$0xff] }
  0x1d   :  { %497 = vmatpush.bf16.msra.mxu2 %v918_v24  ;;  %v961_v15 = vld [vmem:[%s1097_s2] ss:$0 sm:$0xff] }
  0x1e   :  { %510 = vmatpush.bf16.msra.mxu3 %v926_v25  ;;  %v962_v33 = vld [vmem:[%s1099_s4] ss:$0 sm:$0xff] }
  0x1f   :  { %472 = vmatpush.bf16.msra.mxu0 %v901_v26 }
  0x20   :  { %485 = vmatpush.bf16.msra.mxu1 %v909_v27 }
  0x21   :  { %498 = vmatpush.bf16.msra.mxu2 %v917_v28 }
  0x22   :  { %511 = vmatpush.bf16.msra.mxu3 %v925_v31 }
  0x23   :  { %473 = vmatpush.bf16.msra.mxu0 %v900_v29 }
  0x24   :  { %486 = vmatpush.bf16.msra.mxu1 %v908_v30 }
  0x25   :  { %499 = vmatpush.bf16.msra.mxu2 %v916_v36 }
  0x26   :  { %474 = vmatmul.bf16.vlgmr.msra.gmra.mxu0 %v59_v38  ;;  %512 = vmatpush.bf16.msra.mxu3 %v924_v40 }
  0x27   :  { %518 = vmatpush.bf16.msrb.mxu0 %v939_v34  ;;  %487 = vmatmul.bf16.vlgmr.msra.gmra.mxu1 %v60_v39 }
  0x28   :  { %531 = vmatpush.bf16.msrb.mxu1 %v947_v35  ;;  %500 = vmatmul.bf16.vlgmr.msra.gmra.mxu2 %v61_v45 }
  0x29   :  { %551 = vmatpush.bf16.msrb.mxu2 %v948_v41  ;;  %513 = vmatmul.bf16.vlgmr.msra.gmra.mxu3 %v62_v46 }
  0x2a   :  { %627 = vmatpush.bf16.msrb.mxu3 %v956_v1 }
  0x2b   :  { %519 = vmatpush.bf16.msrb.mxu0 %v938_v43 }
  0x2c   :  { %532 = vmatpush.bf16.msrb.mxu1 %v946_v44 }
  0x2e   :  { %628 = vmatpush.bf16.msrb.mxu3 %v955_v2 }
  0x2f   :  { %520 = vmatpush.bf16.msrb.mxu0 %v937_v47 }
  0x30   :  { %533 = vmatpush.bf16.msrb.mxu1 %v945_v48 }
  0x32   :  { %629 = vmatpush.bf16.msrb.mxu3 %v954_v3 }
  0x33   :  { %521 = vmatpush.bf16.msrb.mxu0 %v936_v49 }
  0x34   :  { %534 = vmatpush.bf16.msrb.mxu1 %v944_v50 }
  0x36   :  { %630 = vmatpush.bf16.msrb.mxu3 %v953_v4 }
  0x37   :  { %522 = vmatpush.bf16.msrb.mxu0 %v935_v51 }
  0x38   :  { %535 = vmatpush.bf16.msrb.mxu1 %v943_v52  ;;  %867 = vmatmul.msk.bf16.vlgmr.msrb.gmra.mxu2 %vm462_vm0, %v65_v56 }
  0x3a   :  { %631 = vmatpush.bf16.msrb.mxu3 %v952_v5 }
  0x3b   :  { %523 = vmatpush.bf16.msrb.mxu0 %v934_v54 }
  0x3c   :  { %536 = vmatpush.bf16.msrb.mxu1 %v942_v55 }
  0x3e   :  { %632 = vmatpush.bf16.msrb.mxu3 %v951_v6 }
  0x3f   :  { %524 = vmatpush.bf16.msrb.mxu0 %v933_v57 }
  0x40   :  { %537 = vmatpush.bf16.msrb.mxu1 %v941_v58 }
  0x42   :  { %633 = vmatpush.bf16.msrb.mxu3 %v950_v7 }
  0x43   :  { %525 = vmatpush.bf16.msrb.mxu0 %v932_v59 }
  0x44   :  { %538 = vmatpush.bf16.msrb.mxu1 %v940_v60 }
  0x46   :  { %526 = vmatmul.bf16.vlgmr.msrb.gmra.mxu0 %v63_v63  ;;  %634 = vmatpush.bf16.msrb.mxu3 %v949_v10 }
  0x47   :  { %539 = vmatmul.bf16.vlgmr.msrb.gmra.mxu1 %v64_v0 }
  0xa3   :  { %v475_v8 = vpop.f32.mrf.mxu0 }
  0xa4   :  { %v488_v9 = vpop.f32.mrf.mxu1  ;;  %v476_v16 = vadd.f32 %v961_v15, %v475_v8 }
  0xa6   :  { %v489_v19 = vadd.f32 %v488_v9, %v476_v16 }
  0xab   :  { %v477_v11 = vpop.f32.mrf.mxu0  ;;  %v501_v13 = vpop.f32.mrf.mxu2 }
  0xac   :  { %v490_v12 = vpop.f32.mrf.mxu1  ;;  %v514_v14 = vpop.f32.mrf.mxu3  ;;  %v502_v20 = vadd.f32 %v501_v13, %v489_v19 }
  0xae   :  { %v515_v22 = vadd.f32 %v514_v14, %v502_v20 }
  0xb3   :  { %v503_v17 = vpop.f32.mrf.mxu2 }
  0xb4   :  { %v516_v18 = vpop.f32.mrf.mxu3 }
  0xbb   :  { %v553_v21 = vpop.f32.mrf.mxu2 }
  0xc3   :  { %v527_v23 = vpop.f32.mrf.mxu0  ;;  %v555_v27 = vpop.f32.mrf.mxu2 }
  0xc4   :  { %v540_v24 = vpop.f32.mrf.mxu1  ;;  %v528_v25 = vadd.f32 %v527_v23, %v515_v22 }
  0xc6   :  { %v541_v26 = vadd.f32 %v540_v24, %v528_v25 }
  0xc8   :  { %v554_v28 = vadd.f32 %v553_v21, %v541_v26 }
  0xca   :  { %v557_v29 = vmax.f32 %v554_v28, 0.0 }
  0xcb   :  { %v529_v30 = vpop.f32.mrf.mxu0 }
  0xcc   :  { %v542_v31 = vpop.f32.mrf.mxu1  ;;  %v558_v32 = vpack.c.bf16 %v557_v29, %v557_v29 }
  0xce   :  { %635 = vmatmul.bf16.vlgmr.msrb.gmra.mxu3 %v558_v32 }
 0x151   :  { %v636_v34 = vpop.f32.mrf.mxu3 }
 0x152   :  { %v637_v35 = vadd.f32 %v962_v33, %v636_v34 }
 0x154   :  { %v641_v36 = vsel %vm640_vm1, %v637_v35, -inf }
 0x155   :  { %642 = vmax.xlane.f32.xlu0 %v641_v36 }
 0x159   :  { %v638_v37 = vpop.f32.mrf.mxu3 }
 0x1c8   :  { %v643_v38 = vpop.xlane.xlu0 %642 }
 0x1c9   :  { %v644_v39 = vsub.f32 %v637_v35, %v643_v38 }
 0x1cb   :  { %v645_v40 = vmul.f32 1.442695, %v644_v39 }
 0x1cd   :  { %963 = vpow2.f32 %v645_v40 }
 0x1d3   :  { %v964_v41 = vpop.eup %963 }
 0x1d4   :  { %v647_v42 = vsel %vm640_vm1, %v964_v41, 0.0 }
 0x1d5   :  { %648 = vadd.xlane.f32.xlu0 %v647_v42 }
 0x248   :  { %v649_v43 = vpop.xlane.xlu0 %648 }
 0x249   :  { %965 = vlog2.f32 %v649_v43 }
 0x24f   :  { %v966_v44 = vpop.eup %965 }
 0x250   :  { %v651_v45 = vmul.f32 0.6931472, %v966_v44 }
 0x252   :  { %v652_v46 = vsub.f32 %v644_v39, %v651_v45 }
 0x254   :  { %653 = vst [vmem:[#allocation5] sm:$0x3] %v652_v46 }
 0x255   :  { %664 = dma.vmem_to_hbm [thread:$0]  %s660_s21, 32, %s662_s23, [#allocation4]  }
 0x256   :  { %1017 = dma.done.wait [#allocation4], 32  }
 0x257   :  { %1018 = vsyncadd [#allocation4], 4294967264 }
 0x258   :  { %669 = vsyncpa [#allocation3], 1 }
 0x259   :  { %670 = vsyncpa [#allocation4], 1 }

</bundles_post_ra>
